<compile_context>
chip_gen: v7x
topology: tpu7x:2x2x1
jax: 0.10.0
libtpu: 0.0.40
codegen_flags: <defaults>
</compile_context>

<pallas_src>
import jax
import jax.numpy as jnp
from jax.experimental import pallas as pl
from jax.experimental.pallas import tpu as pltpu


OUT_PAD = 128        # fused [MTL1 | MTL2] heads, zero-padded to one lane-dense vreg row
N_MTL1, N_MTL2 = 3, 2


def _round_up(x, m):
    return (x + m - 1) // m * m


def _tpu_generation():
    try:
        kind = jax.devices()[0].device_kind.lower()
    except Exception:
        kind = ""
    if "v7" in kind:
        return "v7x"
    if "v6" in kind:
        return "v6e"
    if "v5" in kind:
        return "v5e"
    return "other"


# ----------------------------------------------------------------------------
# Kernels
# ----------------------------------------------------------------------------
def _mtl_kernel_resident(x_ref, wb_ref, bb_ref, w12_ref, b12_ref, o_ref):
    """Resident-weight path: one batch tile per grid step, full K in one dot.

    x_ref  : (TILE_B, K_PAD)   f32/bf16  input activations tile (cast in-kernel)
    wb_ref : (K_PAD, FC_PAD)   bf16      full backbone weight (constant index -> VMEM-resident)
    bb_ref : (1, FC_PAD)       f32       backbone bias
    w12_ref: (FC_PAD, OUT_PAD) bf16      fused [MTL1 | MTL2] head weights (zero-padded)
    b12_ref: (1, OUT_PAD)      f32       fused head bias (zero-padded)
    o_ref  : (TILE_B, OUT_PAD) f32       fused lane-dense output
    """
    x = x_ref[...].astype(jnp.bfloat16)
    feat = jnp.dot(x, wb_ref[...], preferred_element_type=jnp.float32)
    feat = jnp.maximum(feat + bb_ref[...], 0.0)
    # Dropout(p=0.3) in eval mode == identity (no mask, no scaling).
    # TODO(synk): training-mode dropout would use pltpu.prng_seed +
    #             pltpu.stateful_bernoulli(p=0.3) with 1/(1-p) scaling.
    o_ref[...] = (jnp.dot(feat.astype(jnp.bfloat16), w12_ref[...],
                          preferred_element_type=jnp.float32) + b12_ref[...])


def _mtl_kernel_tiled(x_ref, wb_ref, bb_ref, w12_ref, b12_ref, o_ref, acc_ref):
    """Tiled-K fallback (backbone weight too large for VMEM residency)."""
    k = pl.program_id(1)

    @pl.when(k == 0)
    def _init():
        acc_ref[...] = jnp.zeros_like(acc_ref)

    acc_ref[...] += jnp.dot(x_ref[...].astype(jnp.bfloat16), wb_ref[...],
                            preferred_element_type=jnp.float32)

    @pl.when(k == pl.num_programs(1) - 1)
    def _finalize():
        feat = jnp.maximum(acc_ref[...] + bb_ref[...], 0.0)
        # Dropout(p=0.3) eval mode == identity.
        o_ref[...] = (jnp.dot(feat.astype(jnp.bfloat16), w12_ref[...],
                              preferred_element_type=jnp.float32) + b12_ref[...])


# ----------------------------------------------------------------------------
# One-time weight preparation (hoisted out of the per-call forward)
# ----------------------------------------------------------------------------
def prepare_params(params, *, fc_align=256, k_align=512):
    """Pad / cast / fuse the weights once. Returns device arrays reused by every
    forward call, so weight-side HBM writes are not repeated per step."""
    wb = params["wb"]          # [Din, FC]  f32
    bb = params["bb"]          # [1, FC]    f32
    din, fc = wb.shape
    k_pad = _round_up(din, k_align)
    fc_pad = _round_up(fc, fc_align)   # 256-granular: fills 2x256x256 MXU (v6e/v7x)

    wb_p = jnp.zeros((k_pad, fc_pad), jnp.bfloat16).at[:din, :fc].set(
        wb.astype(jnp.bfloat16))
    bb_p = jnp.zeros((1, fc_pad), jnp.float32).at[:, :fc].set(bb.astype(jnp.float32))

    w12 = jnp.concatenate([params["w1"], params["w2"]], axis=1)   # [FC, 5]
    b12 = jnp.concatenate([params["b1"], params["b2"]], axis=1)   # [1, 5]
    n_out = w12.shape[1]
    w12_p = jnp.zeros((fc_pad, OUT_PAD), jnp.bfloat16).at[:fc, :n_out].set(
        w12.astype(jnp.bfloat16))
    b12_p = jnp.zeros((1, OUT_PAD), jnp.float32).at[:, :n_out].set(
        b12.astype(jnp.float32))
    return {"wb_p": wb_p, "bb_p": bb_p, "w12_p": w12_p, "b12_p": b12_p}


# ----------------------------------------------------------------------------
# Forward
# ----------------------------------------------------------------------------
def mtl_model_forward(x_nchw, prepped):
    """x_nchw: [B, C, H, W] float32. Returns (out1 [B,3], out2 [B,2])."""
    wb_p, bb_p = prepped["wb_p"], prepped["bb_p"]
    w12_p, b12_p = prepped["w12_p"], prepped["b12_p"]
    k_pad, fc_pad = wb_p.shape

    B = x_nchw.shape[0]
    x_flat = x_nchw.reshape(B, -1)            # flatten NCHW (metadata only)
    din = x_flat.shape[1]
    assert din <= k_pad, "prepare_params was built for a smaller input size"

    gen = _tpu_generation()
    is_v7x = (gen == "v7x")
    vmem_limit = (96 if gen in ("v5e", "v6e") else 48) * 1024 * 1024
    vmem_budget = int(0.70 * vmem_limit)

    # ---- batch tile derivation ---------------------------------------------
    tile_b_cap = 256 if is_v7x else 512       # 256-granular fills v6e/v7x MXU
    if is_v7x and B >= 32:
        # keep >= 2 batch tiles so the "parallel" axis feeds both TensorCores
        tile_b_cap = min(tile_b_cap, max(16, _round_up((B + 1) // 2, 16)))
    tile_b = min(tile_b_cap, _round_up(B, 16))   # bf16 packs 2 rows per sublane

    wb_bytes = k_pad * fc_pad * 2                                   # bf16
    head_bytes = 2 * (fc_pad * OUT_PAD * 2) + 2 * (fc_pad + OUT_PAD) * 4

    def resident_fits(tb):
        per = (2 * tb * k_pad * 4        # x tile (f32 worst case), double-buffered
               + 2 * tb * OUT_PAD * 4    # output tile
               + 2 * tb * fc_pad * 4)    # feat temp + slack
        return 2 * wb_bytes + head_bytes + per <= vmem_budget

    def tiled_fits(tb, tk):
        per = (2 * tb * tk * 4           # x tile
               + 2 * tk * fc_pad * 2     # wb tile (bf16)
               + tb * fc_pad * 4         # accumulator scratch
               + 2 * tb * OUT_PAD * 4)   # output tile
        return per + head_bytes <= vmem_budget

    resident = resident_fits(16)         # wb (+ minimal batch tile) fits VMEM?

    if resident:
        while tile_b > 16 and not resident_fits(tile_b):
            tile_b = max(16, _round_up(tile_b // 2, 16))
    else:
        tile_k = 1024 if (not is_v7x and k_pad % 1024 == 0) else 512
        tile_k = min(tile_k, k_pad)
        while tile_b > 16 and not tiled_fits(tile_b, tile_k):
            tile_b = max(16, _round_up(tile_b // 2, 16))

    b_pad = _round_up(B, tile_b)

    # ---- activation prep: no padded copy when already aligned ---------------
    needs_pad = (b_pad != B) or (k_pad != din)
    if needs_pad:
        x_in = jnp.zeros((b_pad, k_pad), jnp.bfloat16).at[:B, :din].set(
            x_flat.astype(jnp.bfloat16))
    else:
        x_in = x_flat   # single HBM read; bf16 cast happens in-kernel (VPU, free)

    flops = int(2 * b_pad * k_pad * fc_pad + 2 * b_pad * fc_pad * OUT_PAD)

    if resident:
        grid = (b_pad // tile_b,)
        bytes_accessed = int(
            x_in.size * x_in.dtype.itemsize          # x, streamed once
            + wb_p.size * 2                          # wb, fetched once (resident)
            + w12_p.size * 2 + bb_p.size * 4 + b12_p.size * 4
            + b_pad * OUT_PAD * 4)                   # output
        out = pl.pallas_call(
            _mtl_kernel_resident,
            out_shape=jax.ShapeDtypeStruct((b_pad, OUT_PAD), jnp.float32),
            grid_spec=pltpu.PrefetchScalarGridSpec(
                num_scalar_prefetch=0,
                grid=grid,
                in_specs=[
                    pl.BlockSpec((tile_b, k_pad), lambda i: (i, 0)),     # x
                    pl.BlockSpec((k_pad, fc_pad), lambda i: (0, 0)),     # wb (resident)
                    pl.BlockSpec((1, fc_pad), lambda i: (0, 0)),         # bb
                    pl.BlockSpec((fc_pad, OUT_PAD), lambda i: (0, 0)),   # w12
                    pl.BlockSpec((1, OUT_PAD), lambda i: (0, 0)),        # b12
                ],
                out_specs=pl.BlockSpec((tile_b, OUT_PAD), lambda i: (i, 0)),
            ),
            compiler_params=pltpu.CompilerParams(
                dimension_semantics=("parallel",),
                vmem_limit_bytes=vmem_limit),
            cost_estimate=pl.CostEstimate(
                flops=flops, transcendentals=0, bytes_accessed=bytes_accessed),
        )(x_in, wb_p, bb_p, w12_p, b12_p)
    else:
        grid = (b_pad // tile_b, k_pad // tile_k)
        bytes_accessed = int(
            x_in.size * x_in.dtype.itemsize
            + wb_p.size * 2 * grid[0]                # wb re-streamed per batch tile
            + w12_p.size * 2 + bb_p.size * 4 + b12_p.size * 4
            + b_pad * OUT_PAD * 4)
        out = pl.pallas_call(
            _mtl_kernel_tiled,
            out_shape=jax.ShapeDtypeStruct((b_pad, OUT_PAD), jnp.float32),
            grid_spec=pltpu.PrefetchScalarGridSpec(
                num_scalar_prefetch=0,
                grid=grid,
                in_specs=[
                    pl.BlockSpec((tile_b, tile_k), lambda i, k: (i, k)),    # x
                    pl.BlockSpec((tile_k, fc_pad), lambda i, k: (k, 0)),    # wb
                    pl.BlockSpec((1, fc_pad), lambda i, k: (0, 0)),         # bb
                    pl.BlockSpec((fc_pad, OUT_PAD), lambda i, k: (0, 0)),   # w12
                    pl.BlockSpec((1, OUT_PAD), lambda i, k: (0, 0)),        # b12
                ],
                out_specs=pl.BlockSpec((tile_b, OUT_PAD), lambda i, k: (i, 0)),
                scratch_shapes=[pltpu.VMEM((tile_b, fc_pad), jnp.float32)],
            ),
            compiler_params=pltpu.CompilerParams(
                dimension_semantics=("parallel", "arbitrary"),
                vmem_limit_bytes=vmem_limit),
            cost_estimate=pl.CostEstimate(
                flops=flops, transcendentals=0, bytes_accessed=bytes_accessed),
        )(x_in, wb_p, bb_p, w12_p, b12_p)

    return out[:B, :N_MTL1], out[:B, N_MTL1:N_MTL1 + N_MTL2]


# ----------------------------------------------------------------------------
# Params / reference / test
# ----------------------------------------------------------------------------
def init_params(key, din, fc_size):
    """Deterministic init mimicking PyTorch nn.Linear (uniform +-1/sqrt(fan_in)).
    Weights stored transposed as [in, out] for the kernel."""
    ks = jax.random.split(key, 6)

    def lin(kw, kb, fan_in, fan_out):
        bound = 1.0 / jnp.sqrt(fan_in)
        w = jax.random.uniform(kw, (fan_in, fan_out), jnp.float32, -bound, bound)
        b = jax.random.uniform(kb, (1, fan_out), jnp.float32, -bound, bound)
        return w, b

    wb, bb = lin(ks[0], ks[1], din, fc_size)   # backbone
    w1, b1 = lin(ks[2], ks[3], fc_size, 3)     # MTL1
    w2, b2 = lin(ks[4], ks[5], fc_size, 2)     # MTL2
    return {"wb": wb, "bb": bb, "w1": w1, "b1": b1, "w2": w2, "b2": b2}


def _reference(x_nchw, p):
    """Pure-JAX reference emulating the kernel's numerics (bf16 x/wb/feat/heads
    with f32 accumulation, eval-mode dropout) so the comparison is tight.
    Fidelity note: this intentionally differs from a pure-f32 PyTorch forward
    by the bf16 rounding (documented, ~1e-3 absolute on these scales)."""
    f32 = jnp.float32
    x = x_nchw.reshape(x_nchw.shape[0], -1).astype(jnp.bfloat16).astype(f32)
    wb = p["wb"].astype(jnp.bfloat16).astype(f32)
    feat = jnp.maximum(jnp.dot(x, wb, precision="highest") + p["bb"], 0.0)
    feat = feat.astype(jnp.bfloat16).astype(f32)
    w1 = p["w1"].astype(jnp.bfloat16).astype(f32)
    w2 = p["w2"].astype(jnp.bfloat16).astype(f32)
    o1 = jnp.dot(feat, w1, precision="highest") + p["b1"]
    o2 = jnp.dot(feat, w2, precision="highest") + p["b2"]
    return o1, o2


if __name__ == "__main__":
    B, C, H, W = 2, 4, 16, 16
    fc_size = 32
    din = C * H * W

    key = jax.random.PRNGKey(0)
    kx, kp = jax.random.split(key)
    x = jax.random.normal(kx, (B, C, H, W), dtype=jnp.float32)
    params = init_params(kp, din, fc_size)

    # One-time weight prep (hoisted out of the per-call forward).
    prepped = jax.block_until_ready(prepare_params(params))

    forward = jax.jit(mtl_model_forward)
    out1, out2 = forward(x, prepped)
    jax.block_until_ready((out1, out2))

    ref1, ref2 = _reference(x, params)
    assert out1.shape == (B, 3) and out2.shape == (B, 2)
    assert jnp.allclose(out1, ref1, atol=2e-3, rtol=2e-3)
    assert jnp.allclose(out2, ref2, atol=2e-3, rtol=2e-3)

    print("KERNEL_OK")
</pallas_src>

<mosaic_0001>
module attributes {stable_mosaic.version = 11 : i64} {
  func.func @_mtl_kernel_resident(%arg0: i32, %arg1: memref<16x1024xbf16, #tpu.memory_space<vmem>>, %arg2: memref<1024x256xbf16, #tpu.memory_space<vmem>>, %arg3: memref<1x256xf32, #tpu.memory_space<vmem>>, %arg4: memref<256x128xbf16, #tpu.memory_space<vmem>>, %arg5: memref<1x128xf32, #tpu.memory_space<vmem>>, %arg6: memref<16x128xf32, #tpu.memory_space<vmem>>) attributes {dimension_semantics = [#tpu.dimension_semantics<parallel>], iteration_bounds = array<i64: 1>, scalar_prefetch = 0 : i64, scratch_operands = 0 : i64, tpu.core_type = #tpu.core_type<tc>, window_params = [{transform_indices = @transform_0, window_bounds = array<i64: 16, 1024>}, {pipeline_mode = #tpu.pipeline_mode<synchronous>, transform_indices = @transform_1, window_bounds = array<i64: 1024, 256>}, {pipeline_mode = #tpu.pipeline_mode<synchronous>, transform_indices = @transform_2, window_bounds = array<i64: 1, 256>}, {pipeline_mode = #tpu.pipeline_mode<synchronous>, transform_indices = @transform_3, window_bounds = array<i64: 256, 128>}, {pipeline_mode = #tpu.pipeline_mode<synchronous>, transform_indices = @transform_4, window_bounds = array<i64: 1, 128>}, {transform_indices = @transform_5, window_bounds = array<i64: 16, 128>}]} {
    %c0 = arith.constant 0 : index
    %c0_0 = arith.constant 0 : index
    %0 = vector.load %arg1[%c0, %c0_0] : memref<16x1024xbf16, #tpu.memory_space<vmem>>, vector<16x1024xbf16>
    %c0_1 = arith.constant 0 : index
    %c0_2 = arith.constant 0 : index
    %1 = vector.load %arg2[%c0_1, %c0_2] : memref<1024x256xbf16, #tpu.memory_space<vmem>>, vector<1024x256xbf16>
    %cst = arith.constant dense<0.000000e+00> : vector<16x256xf32>
    %2 = tpu.matmul %0, %1, %cst {dimension_numbers = #tpu.dot_dimension_numbers<[1], [0], [0], [1], [0, 0, 1, 1], [], []>} : vector<16x1024xbf16>, vector<1024x256xbf16>, vector<16x256xf32> -> vector<16x256xf32>
    %c0_3 = arith.constant 0 : index
    %c0_4 = arith.constant 0 : index
    %3 = vector.load %arg3[%c0_3, %c0_4] : memref<1x256xf32, #tpu.memory_space<vmem>>, vector<1x256xf32>
    %4 = vector.broadcast %3 : vector<1x256xf32> to vector<16x256xf32>
    %5 = arith.addf %2, %4 : vector<16x256xf32>
    %cst_5 = arith.constant 0.000000e+00 : f32
    %6 = vector.broadcast %cst_5 : f32 to vector<16x256xf32>
    %7 = arith.maximumf %5, %6 : vector<16x256xf32>
    %8 = arith.truncf %7 : vector<16x256xf32> to vector<16x256xbf16>
    %c0_6 = arith.constant 0 : index
    %c0_7 = arith.constant 0 : index
    %9 = vector.load %arg4[%c0_6, %c0_7] : memref<256x128xbf16, #tpu.memory_space<vmem>>, vector<256x128xbf16>
    %cst_8 = arith.constant dense<0.000000e+00> : vector<16x128xf32>
    %10 = tpu.matmul %8, %9, %cst_8 {dimension_numbers = #tpu.dot_dimension_numbers<[1], [0], [0], [1], [0, 0, 1, 1], [], []>} : vector<16x256xbf16>, vector<256x128xbf16>, vector<16x128xf32> -> vector<16x128xf32>
    %c0_9 = arith.constant 0 : index
    %c0_10 = arith.constant 0 : index
    %11 = vector.load %arg5[%c0_9, %c0_10] : memref<1x128xf32, #tpu.memory_space<vmem>>, vector<1x128xf32>
    %12 = vector.broadcast %11 : vector<1x128xf32> to vector<16x128xf32>
    %13 = arith.addf %10, %12 : vector<16x128xf32>
    %c0_11 = arith.constant 0 : index
    %c0_12 = arith.constant 0 : index
    %14 = vector.load %arg6[%c0_11, %c0_12] : memref<16x128xf32, #tpu.memory_space<vmem>>, vector<16x128xf32>
    tpu.vector_store %arg6[%c0_11, %c0_12], %13 {strides = array<i32>} : memref<16x128xf32, #tpu.memory_space<vmem>>, vector<16x128xf32>,
    return
  }
  func.func @transform_0(%arg0: i32) -> (i32, i32) {
    %c0_i32 = arith.constant 0 : i32
    %c0_i32_0 = arith.constant 0 : i32
    return %arg0, %c0_i32 : i32, i32
  }
  func.func @transform_1(%arg0: i32) -> (i32, i32) {
    %c0_i32 = arith.constant 0 : i32
    %c0_i32_0 = arith.constant 0 : i32
    %c0_i32_1 = arith.constant 0 : i32
    return %c0_i32, %c0_i32_0 : i32, i32
  }
  func.func @transform_2(%arg0: i32) -> (i32, i32) {
    %c0_i32 = arith.constant 0 : i32
    %c0_i32_0 = arith.constant 0 : i32
    %c0_i32_1 = arith.constant 0 : i32
    return %c0_i32, %c0_i32_0 : i32, i32
  }
  func.func @transform_3(%arg0: i32) -> (i32, i32) {
    %c0_i32 = arith.constant 0 : i32
    %c0_i32_0 = arith.constant 0 : i32
    %c0_i32_1 = arith.constant 0 : i32
    return %c0_i32, %c0_i32_0 : i32, i32
  }
  func.func @transform_4(%arg0: i32) -> (i32, i32) {
    %c0_i32 = arith.constant 0 : i32
    %c0_i32_0 = arith.constant 0 : i32
    %c0_i32_1 = arith.constant 0 : i32
    return %c0_i32, %c0_i32_0 : i32, i32
  }
  func.func @transform_5(%arg0: i32) -> (i32, i32) {
    %c0_i32 = arith.constant 0 : i32
    %c0_i32_0 = arith.constant 0 : i32
    return %arg0, %c0_i32 : i32, i32
  }
}

</mosaic_0001>

<bundles_post_ra>
// kernel: mtl_model_forward.1
= control target key start
LH: loop header
LB: loop body
LE: loop exit
PB: predicated region body
PF: predicated region fallthrough
CT: control target
= control target key end

     0   :  { %10 = vsyncpa [#allocation3], 0  ;;  %s1650_s18 = smov [#allocation2]   ;;  %s1795_s0 = inlined_call_operand.vmem [shape: bf16[16,1024], index: 0, kind: input, shape index: {}]   ;;  %s1796_s1 = inlined_call_operand.hbm [shape: bf16[1024,256], index: 1, kind: input, shape index: {}]   ;;  %s1797_s2 = inlined_call_operand.vmem [shape: f32[1,256], index: 2, kind: input, shape index: {}]   ;;  %s1798_s3 = inlined_call_operand.vmem [shape: bf16[256,128], index: 3, kind: input, shape index: {}]   ;;  %s1799_s4 = inlined_call_operand.vmem [shape: f32[1,128], index: 4, kind: input, shape index: {}]   ;;  %s1800_s5 = inlined_call_operand.vmem [shape: f32[16,128], index: 5, kind: output, shape index: {}]  }
   0x1   :  { %s18_s19 = sshll.u32 %s1650_s18, 4  ;;  %s1626_s22 = scalar_lea.hbm %s1796_s1, 16384  ;;  %s19_s19 = int_to_ptr.vmem [resolvable:$true] %s18_s19 }
   0x2   :  { %p1627_p0 = scmp.ne.s32.totalorder %s1796_s1, %s1626_s22  ;;  %p1630_p1 = scmp.lt.u32.totalorder %s1626_s22, %s1796_s1 }
   0x4   :  { %p1632_p2 = pnand %p1630_p1, %p1627_p0 }
   0x6   :  { %1635 = shalt.err (!%p1632_p2)
}
   0x7   :  { %s1636_s27 = scalar_lea.vmem %s19_s19, 16384  ;;  %p1641_p4 = scmp.lt.s32.totalorder %s19_s19, %s19_s19 }
   0x8   :  { %p1637_p3 = scmp.ne.s32.totalorder %s19_s19, %s1636_s27  ;;  %p1642_p5 = scmp.lt.s32.totalorder %s1636_s27, %s1636_s27 }
   0xa   :  { %p1643_p6 = por %p1642_p5, %p1641_p4 }
   0xc   :  { %p1644_p7 = pnand %p1643_p6, %p1637_p3 }
   0xe   :  { %1647 = shalt.err (!%p1644_p7)
}
   0xf   :  { %s1651_s28 = smov 128   ;;  %s1652_s29 = smov 8  }
  0x10   :  { %24 = dma.hbm_to_vmem [thread:$0]  %s1796_s1, 16384, %s19_s19, [#allocation3], %s1651_s28, %s1651_s28, %s1652_s29  }
  0x11   :  { %1648 = dma.done.wait [#allocation3], 16384  }
  0x12   :  { %1649 = vsyncadd [#allocation3], 4294950912  ;;  %v1418_v0 = vld [vmem:[#allocation2 + $0x4] ss:$8 sps:$4 sm:$0xff]   ;;  %v1422_v2 = vld [vmem:[#allocation2] ss:$8 sps:$4 sm:$0xff]  }
  0x13   :  { %v1420_v1 = vld [vmem:[#allocation2 + $0x204] ss:$8 sps:$4 sm:$0xff]   ;;  %863 = vmatprep.subr.bf16.mxu1 %v1418_v0  ;;  %v1423_v3 = vld [vmem:[#allocation2 + $0x200] ss:$8 sps:$4 sm:$0xff]   ;;  %v1424_v4 = vld [vmem:[#allocation2 + $0x14] ss:$8 sps:$4 sm:$0xff]  }
  0x14   :  { %949 = vmatprep.subr.bf16.mxu0 %v1420_v1  ;;  %864 = vmatpush1.bf16.msra.mxu1 %v1422_v2  ;;  %v1426_v5 = vld [vmem:[#allocation2 + $0x214] ss:$8 sps:$4 sm:$0xff]   ;;  %v1428_v6 = vld [vmem:[#allocation2 + $0x10] ss:$8 sps:$4 sm:$0xff]   ;;  %v1430_v8 = vld [vmem:[#allocation2 + $0x24] ss:$8 sps:$4 sm:$0xff]  }
  0x15   :  { %950 = vmatpush1.bf16.msra.mxu0 %v1423_v3  ;;  %865 = vmatprep.subr.bf16.mxu1 %v1424_v4  ;;  %v1429_v7 = vld [vmem:[#allocation2 + $0x210] ss:$8 sps:$4 sm:$0xff]   ;;  %v1432_v9 = vld [vmem:[#allocation2 + $0x224] ss:$8 sps:$4 sm:$0xff]   ;;  %v1434_v10 = vld [vmem:[#allocation2 + $0x20] ss:$8 sps:$4 sm:$0xff]  }
  0x16   :  { %951 = vmatprep.subr.bf16.mxu0 %v1426_v5  ;;  %v1435_v11 = vld [vmem:[#allocation2 + $0x220] ss:$8 sps:$4 sm:$0xff]   ;;  %v1436_v12 = vld [vmem:[#allocation2 + $0x34] ss:$8 sps:$4 sm:$0xff]   ;;  %v1440_v14 = vld [vmem:[#allocation2 + $0x30] ss:$8 sps:$4 sm:$0xff]  }
  0x17   :  { %v1438_v13 = vld [vmem:[#allocation2 + $0x234] ss:$8 sps:$4 sm:$0xff]   ;;  %v1441_v15 = vld [vmem:[#allocation2 + $0x230] ss:$8 sps:$4 sm:$0xff]   ;;  %v1442_v16 = vld [vmem:[#allocation2 + $0x44] ss:$8 sps:$4 sm:$0xff]  }
  0x18   :  { %866 = vmatpush1.bf16.msra.mxu1 %v1428_v6  ;;  %v1444_v17 = vld [vmem:[#allocation2 + $0x244] ss:$8 sps:$4 sm:$0xff]   ;;  %v1446_v18 = vld [vmem:[#allocation2 + $0x40] ss:$8 sps:$4 sm:$0xff]   ;;  %v1448_v20 = vld [vmem:[#allocation2 + $0x54] ss:$8 sps:$4 sm:$0xff]  }
  0x19   :  { %952 = vmatpush1.bf16.msra.mxu0 %v1429_v7  ;;  %867 = vmatprep.subr.bf16.mxu1 %v1430_v8  ;;  %v1447_v19 = vld [vmem:[#allocation2 + $0x240] ss:$8 sps:$4 sm:$0xff]   ;;  %v1450_v21 = vld [vmem:[#allocation2 + $0x254] ss:$8 sps:$4 sm:$0xff]   ;;  %v1452_v22 = vld [vmem:[#allocation2 + $0x50] ss:$8 sps:$4 sm:$0xff]  }
  0x1a   :  { %953 = vmatprep.subr.bf16.mxu0 %v1432_v9  ;;  %v1453_v23 = vld [vmem:[#allocation2 + $0x250] ss:$8 sps:$4 sm:$0xff]   ;;  %v1454_v24 = vld [vmem:[#allocation2 + $0x64] ss:$8 sps:$4 sm:$0xff]   ;;  %v1458_v26 = vld [vmem:[#allocation2 + $0x60] ss:$8 sps:$4 sm:$0xff]  }
  0x1b   :  { %v1456_v25 = vld [vmem:[#allocation2 + $0x264] ss:$8 sps:$4 sm:$0xff]   ;;  %v1459_v27 = vld [vmem:[#allocation2 + $0x260] ss:$8 sps:$4 sm:$0xff]   ;;  %v1460_v28 = vld [vmem:[#allocation2 + $0x74] ss:$8 sps:$4 sm:$0xff]  }
  0x1c   :  { %868 = vmatpush1.bf16.msra.mxu1 %v1434_v10  ;;  %v1462_v29 = vld [vmem:[#allocation2 + $0x274] ss:$8 sps:$4 sm:$0xff]   ;;  %v1464_v30 = vld [vmem:[#allocation2 + $0x70] ss:$8 sps:$4 sm:$0xff]   ;;  %v1466_v32 = vld [vmem:[#allocation2 + $0x84] ss:$8 sps:$4 sm:$0xff]  }
  0x1d   :  { %954 = vmatpush1.bf16.msra.mxu0 %v1435_v11  ;;  %869 = vmatprep.subr.bf16.mxu1 %v1436_v12  ;;  %v1465_v31 = vld [vmem:[#allocation2 + $0x270] ss:$8 sps:$4 sm:$0xff]   ;;  %v1468_v33 = vld [vmem:[#allocation2 + $0x284] ss:$8 sps:$4 sm:$0xff]   ;;  %v1470_v34 = vld [vmem:[#allocation2 + $0x80] ss:$8 sps:$4 sm:$0xff]  }
  0x1e   :  { %955 = vmatprep.subr.bf16.mxu0 %v1438_v13  ;;  %v1471_v35 = vld [vmem:[#allocation2 + $0x280] ss:$8 sps:$4 sm:$0xff]   ;;  %v1472_v36 = vld [vmem:[#allocation2 + $0x94] ss:$8 sps:$4 sm:$0xff]   ;;  %v1476_v38 = vld [vmem:[#allocation2 + $0x90] ss:$8 sps:$4 sm:$0xff]  }
  0x1f   :  { %v1474_v37 = vld [vmem:[#allocation2 + $0x294] ss:$8 sps:$4 sm:$0xff]   ;;  %v1477_v39 = vld [vmem:[#allocation2 + $0x290] ss:$8 sps:$4 sm:$0xff]   ;;  %v1478_v40 = vld [vmem:[#allocation2 + $0xa4] ss:$8 sps:$4 sm:$0xff]  }
  0x20   :  { %870 = vmatpush1.bf16.msra.mxu1 %v1440_v14  ;;  %v1480_v41 = vld [vmem:[#allocation2 + $0x2a4] ss:$8 sps:$4 sm:$0xff]   ;;  %v1482_v42 = vld [vmem:[#allocation2 + $0xa0] ss:$8 sps:$4 sm:$0xff]   ;;  %v1484_v44 = vld [vmem:[#allocation2 + $0xb4] ss:$8 sps:$4 sm:$0xff]  }
  0x21   :  { %956 = vmatpush1.bf16.msra.mxu0 %v1441_v15  ;;  %871 = vmatprep.subr.bf16.mxu1 %v1442_v16  ;;  %v1483_v43 = vld [vmem:[#allocation2 + $0x2a0] ss:$8 sps:$4 sm:$0xff]   ;;  %v1486_v45 = vld [vmem:[#allocation2 + $0x2b4] ss:$8 sps:$4 sm:$0xff]   ;;  %v1488_v46 = vld [vmem:[#allocation2 + $0xb0] ss:$8 sps:$4 sm:$0xff]  }
  0x22   :  { %957 = vmatprep.subr.bf16.mxu0 %v1444_v17  ;;  %v1489_v47 = vld [vmem:[#allocation2 + $0x2b0] ss:$8 sps:$4 sm:$0xff]   ;;  %v35_v48 = vld [vmem:[%s1795_s0] sm:$0xff]  ;;  %v1496_v58 = vld [vmem:[#allocation2 + $0xd4] ss:$8 sps:$4 sm:$0xff]  }
  0x23   :  { %v39_v49 = vld [vmem:[%s1795_s0 + $0x20] sm:$0xff]  ;;  %v37_v53 = vld [vmem:[%s1795_s0 + $0x10] sm:$0xff] }
  0x24   :  { %872 = vmatpush1.bf16.msra.mxu1 %v1446_v18  ;;  %v1490_v50 = vld [vmem:[#allocation2 + $0xc4] ss:$8 sps:$4 sm:$0xff]   ;;  %v1225_v52 = vcombine.high %v35_v48, %v39_v49  ;;  %v41_v54 = vld [vmem:[%s1795_s0 + $0x30] sm:$0xff]  ;;  %v1494_v56 = vld [vmem:[#allocation2 + $0xc0] ss:$8 sps:$4 sm:$0xff]   ;;  %v1224_v8 = vcombine.low %v35_v48, %v39_v49 }
  0x25   :  { %958 = vmatpush1.bf16.msra.mxu0 %v1447_v19  ;;  %873 = vmatprep.subr.bf16.mxu1 %v1448_v20  ;;  %v1492_v51 = vld [vmem:[#allocation2 + $0x2c4] ss:$8 sps:$4 sm:$0xff]   ;;  %v1229_v55 = vcombine.high %v37_v53, %v41_v54  ;;  %v1495_v57 = vld [vmem:[#allocation2 + $0x2c0] ss:$8 sps:$4 sm:$0xff]   ;;  %v1498_v59 = vld [vmem:[#allocation2 + $0x2d4] ss:$8 sps:$4 sm:$0xff]   ;;  %v1228_v10 = vcombine.low %v37_v53, %v41_v54 }
  0x26   :  { %959 = vmatprep.subr.bf16.mxu0 %v1450_v21  ;;  %895 = vmatprep.mubr.bf16.mxu1 %v1225_v52  ;;  %v1500_v60 = vld [vmem:[#allocation2 + $0xd0] ss:$8 sps:$4 sm:$0xff]   ;;  %v1502_v62 = vld [vmem:[#allocation2 + $0xe4] ss:$8 sps:$4 sm:$0xff]   ;;  %v1506_v0 = vld [vmem:[#allocation2 + $0xe0] ss:$8 sps:$4 sm:$0xff]  }
  0x27   :  { %981 = vmatprep.mubr.bf16.mxu0 %v1229_v55  ;;  %v1501_v61 = vld [vmem:[#allocation2 + $0x2d0] ss:$8 sps:$4 sm:$0xff]   ;;  %v1504_v63 = vld [vmem:[#allocation2 + $0x2e4] ss:$8 sps:$4 sm:$0xff]   ;;  %v1507_v1 = vld [vmem:[#allocation2 + $0x2e0] ss:$8 sps:$4 sm:$0xff]  }
  0x28   :  { %874 = vmatpush1.bf16.msra.mxu1 %v1452_v22  ;;  %v1508_v2 = vld [vmem:[#allocation2 + $0xf4] ss:$8 sps:$4 sm:$0xff]   ;;  %v1512_v4 = vld [vmem:[#allocation2 + $0xf0] ss:$8 sps:$4 sm:$0xff]   ;;  %v1516_v6 = vld [vmem:[#allocation2 + $0x104] ss:$8 sps:$4 sm:$0xff]  }
  0x29   :  { %960 = vmatpush1.bf16.msra.mxu0 %v1453_v23  ;;  %875 = vmatprep.subr.bf16.mxu1 %v1454_v24  ;;  %v1510_v3 = vld [vmem:[#allocation2 + $0x2f4] ss:$8 sps:$4 sm:$0xff]   ;;  %v1513_v5 = vld [vmem:[#allocation2 + $0x2f0] ss:$8 sps:$4 sm:$0xff]   ;;  %v1519_v7 = vld [vmem:[#allocation2 + $0x304] ss:$8 sps:$4 sm:$0xff]  }
  0x2a   :  { %961 = vmatprep.subr.bf16.mxu0 %v1456_v25  ;;  %v1514_v9 = vld [vmem:[#allocation2 + $0x100] ss:$8 sps:$4 sm:$0xff]   ;;  %v1522_v12 = vld [vmem:[#allocation2 + $0x114] ss:$8 sps:$4 sm:$0xff]   ;;  %v1520_v14 = vld [vmem:[#allocation2 + $0x110] ss:$8 sps:$4 sm:$0xff]  }
  0x2b   :  { %v1517_v11 = vld [vmem:[#allocation2 + $0x300] ss:$8 sps:$4 sm:$0xff]   ;;  %v1525_v13 = vld [vmem:[#allocation2 + $0x314] ss:$8 sps:$4 sm:$0xff]   ;;  %v1523_v15 = vld [vmem:[#allocation2 + $0x310] ss:$8 sps:$4 sm:$0xff]  }
  0x2c   :  { %876 = vmatpush1.bf16.msra.mxu1 %v1458_v26  ;;  %v1528_v16 = vld [vmem:[#allocation2 + $0x124] ss:$8 sps:$4 sm:$0xff]   ;;  %v1526_v18 = vld [vmem:[#allocation2 + $0x120] ss:$8 sps:$4 sm:$0xff]   ;;  %v1534_v20 = vld [vmem:[#allocation2 + $0x134] ss:$8 sps:$4 sm:$0xff]  }
  0x2d   :  { %962 = vmatpush1.bf16.msra.mxu0 %v1459_v27  ;;  %877 = vmatprep.subr.bf16.mxu1 %v1460_v28  ;;  %v1531_v17 = vld [vmem:[#allocation2 + $0x324] ss:$8 sps:$4 sm:$0xff]   ;;  %v1529_v19 = vld [vmem:[#allocation2 + $0x320] ss:$8 sps:$4 sm:$0xff]   ;;  %v1537_v21 = vld [vmem:[#allocation2 + $0x334] ss:$8 sps:$4 sm:$0xff]  }
  0x2e   :  { %963 = vmatprep.subr.bf16.mxu0 %v1462_v29  ;;  %v1532_v22 = vld [vmem:[#allocation2 + $0x130] ss:$8 sps:$4 sm:$0xff]   ;;  %v1540_v24 = vld [vmem:[#allocation2 + $0x144] ss:$8 sps:$4 sm:$0xff]   ;;  %v1538_v26 = vld [vmem:[#allocation2 + $0x140] ss:$8 sps:$4 sm:$0xff]  }
  0x2f   :  { %v1535_v23 = vld [vmem:[#allocation2 + $0x330] ss:$8 sps:$4 sm:$0xff]   ;;  %v1543_v25 = vld [vmem:[#allocation2 + $0x344] ss:$8 sps:$4 sm:$0xff]   ;;  %v1541_v27 = vld [vmem:[#allocation2 + $0x340] ss:$8 sps:$4 sm:$0xff]  }
  0x30   :  { %878 = vmatpush1.bf16.msra.mxu1 %v1464_v30  ;;  %v1546_v28 = vld [vmem:[#allocation2 + $0x154] ss:$8 sps:$4 sm:$0xff]   ;;  %v1544_v30 = vld [vmem:[#allocation2 + $0x150] ss:$8 sps:$4 sm:$0xff]   ;;  %v1562_v48 = vld [vmem:[#allocation2 + $0x180] ss:$8 sps:$4 sm:$0xff]  }
  0x31   :  { %964 = vmatpush1.bf16.msra.mxu0 %v1465_v31  ;;  %879 = vmatprep.subr.bf16.mxu1 %v1466_v32  ;;  %v1549_v29 = vld [vmem:[#allocation2 + $0x354] ss:$8 sps:$4 sm:$0xff]   ;;  %v1547_v31 = vld [vmem:[#allocation2 + $0x350] ss:$8 sps:$4 sm:$0xff]   ;;  %v1552_v32 = vld [vmem:[#allocation2 + $0x164] ss:$8 sps:$4 sm:$0xff]  }
  0x32   :  { %965 = vmatprep.subr.bf16.mxu0 %v1468_v33  ;;  %v1555_v33 = vld [vmem:[#allocation2 + $0x364] ss:$8 sps:$4 sm:$0xff]   ;;  %v1565_v49 = vld [vmem:[#allocation2 + $0x380] ss:$8 sps:$4 sm:$0xff]   ;;  %v1568_v52 = vld [vmem:[#allocation2 + $0x190] ss:$8 sps:$4 sm:$0xff]  }
  0x33   :  { %v1571_v53 = vld [vmem:[#allocation2 + $0x390] ss:$8 sps:$4 sm:$0xff]   ;;  %v1576_v54 = vld [vmem:[#allocation2 + $0x1a4] ss:$8 sps:$4 sm:$0xff]  }
  0x34   :  { %880 = vmatpush1.bf16.msra.mxu1 %v1470_v34  ;;  %v1550_v34 = vld [vmem:[#allocation2 + $0x160] ss:$8 sps:$4 sm:$0xff]   ;;  %v1579_v55 = vld [vmem:[#allocation2 + $0x3a4] ss:$8 sps:$4 sm:$0xff]  }
  0x35   :  { %966 = vmatpush1.bf16.msra.mxu0 %v1471_v35  ;;  %881 = vmatprep.subr.bf16.mxu1 %v1472_v36  ;;  %v1553_v35 = vld [vmem:[#allocation2 + $0x360] ss:$8 sps:$4 sm:$0xff]  }
  0x36   :  { %967 = vmatprep.subr.bf16.mxu0 %v1474_v37  ;;  %v1710_v36 = vld [vmem:[%s1795_s0 + $0x8] sm:$0xff] }
  0x37   :  { %v1715_v37 = vld [vmem:[%s1795_s0 + $0x28] sm:$0xff] }
  0x38   :  { %882 = vmatpush1.bf16.msra.mxu1 %v1476_v38  ;;  %v1720_v38 = vld [vmem:[%s1795_s0 + $0x18] sm:$0xff] }
  0x39   :  { %968 = vmatpush1.bf16.msra.mxu0 %v1477_v39  ;;  %883 = vmatprep.subr.bf16.mxu1 %v1478_v40  ;;  %v1725_v39 = vld [vmem:[%s1795_s0 + $0x38] sm:$0xff] }
  0x3a   :  { %969 = vmatprep.subr.bf16.mxu0 %v1480_v41  ;;  %v1558_v40 = vld [vmem:[#allocation2 + $0x174] ss:$8 sps:$4 sm:$0xff]   ;;  %v1227_v41 = vcombine.high %v1710_v36, %v1715_v37 }
  0x3c   :  { %884 = vmatpush1.bf16.msra.mxu1 %v1482_v42  ;;  %v1561_v42 = vld [vmem:[#allocation2 + $0x374] ss:$8 sps:$4 sm:$0xff]  }
  0x3d   :  { %970 = vmatpush1.bf16.msra.mxu0 %v1483_v43  ;;  %885 = vmatprep.subr.bf16.mxu1 %v1484_v44  ;;  %v1231_v43 = vcombine.high %v1720_v38, %v1725_v39  ;;  %v1556_v44 = vld [vmem:[#allocation2 + $0x170] ss:$8 sps:$4 sm:$0xff]  }
  0x3e   :  { %971 = vmatprep.subr.bf16.mxu0 %v1486_v45  ;;  %v1559_v45 = vld [vmem:[#allocation2 + $0x370] ss:$8 sps:$4 sm:$0xff]  }
  0x40   :  { %886 = vmatpush1.bf16.msra.mxu1 %v1488_v46  ;;  %v1564_v46 = vld [vmem:[#allocation2 + $0x184] ss:$8 sps:$4 sm:$0xff]  }
  0x41   :  { %972 = vmatpush1.bf16.msra.mxu0 %v1489_v47  ;;  %887 = vmatprep.subr.bf16.mxu1 %v1490_v50  ;;  %v1567_v47 = vld [vmem:[#allocation2 + $0x384] ss:$8 sps:$4 sm:$0xff]   ;;  %v1570_v50 = vld [vmem:[#allocation2 + $0x194] ss:$8 sps:$4 sm:$0xff]  }
  0x42   :  { %973 = vmatprep.subr.bf16.mxu0 %v1492_v51  ;;  %v1573_v51 = vld [vmem:[#allocation2 + $0x394] ss:$8 sps:$4 sm:$0xff]  }
  0x44   :  { %888 = vmatpush1.bf16.msra.mxu1 %v1494_v56  ;;  %v1574_v56 = vld [vmem:[#allocation2 + $0x1a0] ss:$8 sps:$4 sm:$0xff]  }
  0x45   :  { %974 = vmatpush1.bf16.msra.mxu0 %v1495_v57  ;;  %889 = vmatprep.subr.bf16.mxu1 %v1496_v58  ;;  %v1577_v57 = vld [vmem:[#allocation2 + $0x3a0] ss:$8 sps:$4 sm:$0xff]   ;;  %v1582_v58 = vld [vmem:[#allocation2 + $0x1b4] ss:$8 sps:$4 sm:$0xff]  }
  0x46   :  { %975 = vmatprep.subr.bf16.mxu0 %v1498_v59  ;;  %v1585_v59 = vld [vmem:[#allocation2 + $0x3b4] ss:$8 sps:$4 sm:$0xff]  }
  0x48   :  { %890 = vmatpush1.bf16.msra.mxu1 %v1500_v60  ;;  %v1580_v60 = vld [vmem:[#allocation2 + $0x1b0] ss:$8 sps:$4 sm:$0xff]  }
  0x49   :  { %976 = vmatpush1.bf16.msra.mxu0 %v1501_v61  ;;  %891 = vmatprep.subr.bf16.mxu1 %v1502_v62  ;;  %v1583_v61 = vld [vmem:[#allocation2 + $0x3b0] ss:$8 sps:$4 sm:$0xff]   ;;  %v1588_v62 = vld [vmem:[#allocation2 + $0x1c4] ss:$8 sps:$4 sm:$0xff]  }
  0x4a   :  { %977 = vmatprep.subr.bf16.mxu0 %v1504_v63  ;;  %v1591_v63 = vld [vmem:[#allocation2 + $0x3c4] ss:$8 sps:$4 sm:$0xff]  }
  0x4c   :  { %892 = vmatpush1.bf16.msra.mxu1 %v1506_v0  ;;  %v1586_v0 = vld [vmem:[#allocation2 + $0x1c0] ss:$8 sps:$4 sm:$0xff]  }
  0x4d   :  { %978 = vmatpush1.bf16.msra.mxu0 %v1507_v1  ;;  %893 = vmatprep.subr.bf16.mxu1 %v1508_v2  ;;  %v1589_v1 = vld [vmem:[#allocation2 + $0x3c0] ss:$8 sps:$4 sm:$0xff]   ;;  %v1594_v2 = vld [vmem:[#allocation2 + $0x1d4] ss:$8 sps:$4 sm:$0xff]  }
  0x4e   :  { %979 = vmatprep.subr.bf16.mxu0 %v1510_v3  ;;  %v1597_v3 = vld [vmem:[#allocation2 + $0x3d4] ss:$8 sps:$4 sm:$0xff]  }
  0x50   :  { %894 = vmatpush1.bf16.msra.mxu1 %v1512_v4  ;;  %v1592_v4 = vld [vmem:[#allocation2 + $0x1d0] ss:$8 sps:$4 sm:$0xff]  }
  0x51   :  { %980 = vmatpush1.bf16.msra.mxu0 %v1513_v5  ;;  %906 = vmatprep.subr.bf16.mxu1 %v1516_v6  ;;  %v1595_v5 = vld [vmem:[#allocation2 + $0x3d0] ss:$8 sps:$4 sm:$0xff]   ;;  %v1600_v6 = vld [vmem:[#allocation2 + $0x1e4] ss:$8 sps:$4 sm:$0xff]  }
  0x52   :  { %992 = vmatprep.subr.bf16.mxu0 %v1519_v7  ;;  %v1603_v7 = vld [vmem:[#allocation2 + $0x3e4] ss:$8 sps:$4 sm:$0xff]  }
  0x53   :  { %896 = vmatmul.mubr.bf16.vlgmr.msra.gmra.mrb[0].mxu1 %v1224_v8  ;;  %v1598_v8 = vld [vmem:[#allocation2 + $0x1e0] ss:$8 sps:$4 sm:$0xff]  }
  0x54   :  { %982 = vmatmul.mubr.bf16.vlgmr.msra.gmra.mrb[0].mxu0 %v1228_v10  ;;  %907 = vmatpush1.bf16.msra.mxu1 %v1514_v9  ;;  %v1601_v9 = vld [vmem:[#allocation2 + $0x3e0] ss:$8 sps:$4 sm:$0xff]   ;;  %v1606_v10 = vld [vmem:[#allocation2 + $0x1f4] ss:$8 sps:$4 sm:$0xff]  }
  0x55   :  { %993 = vmatpush1.bf16.msra.mxu0 %v1517_v11  ;;  %908 = vmatprep.subr.bf16.mxu1 %v1522_v12  ;;  %v1609_v11 = vld [vmem:[#allocation2 + $0x3f4] ss:$8 sps:$4 sm:$0xff]   ;;  %v1604_v12 = vld [vmem:[#allocation2 + $0x1f0] ss:$8 sps:$4 sm:$0xff]  }
  0x56   :  { %994 = vmatprep.subr.bf16.mxu0 %v1525_v13  ;;  %938 = vmatprep.mubr.bf16.mxu1 %v1227_v41  ;;  %v1607_v13 = vld [vmem:[#allocation2 + $0x3f0] ss:$8 sps:$4 sm:$0xff]  }
  0x57   :  { %1024 = vmatprep.mubr.bf16.mxu0 %v1231_v43 }
  0x58   :  { %909 = vmatpush1.bf16.msra.mxu1 %v1520_v14  ;;  %v1610_v14 = vld [vmem:[%s1798_s3 + $0x40] sm:$0xff]  }
  0x59   :  { %995 = vmatpush1.bf16.msra.mxu0 %v1523_v15  ;;  %910 = vmatprep.subr.bf16.mxu1 %v1528_v16  ;;  %v1226_v15 = vcombine.low %v1710_v36, %v1715_v37  ;;  %v1230_v16 = vcombine.low %v1720_v38, %v1725_v39 }
  0x5a   :  { %996 = vmatprep.subr.bf16.mxu0 %v1531_v17  ;;  %v1611_v17 = vld [vmem:[%s1798_s3] sm:$0xff]  }
  0x5c   :  { %911 = vmatpush1.bf16.msra.mxu1 %v1526_v18  ;;  %v1612_v18 = vld [vmem:[%s1798_s3 + $0x48] sm:$0xff]  }
  0x5d   :  { %997 = vmatpush1.bf16.msra.mxu0 %v1529_v19  ;;  %912 = vmatprep.subr.bf16.mxu1 %v1534_v20  ;;  %v1613_v19 = vld [vmem:[%s1798_s3 + $0x8] sm:$0xff]   ;;  %v1614_v20 = vld [vmem:[%s1798_s3 + $0x50] sm:$0xff]  }
  0x5e   :  { %998 = vmatprep.subr.bf16.mxu0 %v1537_v21  ;;  %v1615_v21 = vld [vmem:[%s1798_s3 + $0x10] sm:$0xff]  }
  0x60   :  { %913 = vmatpush1.bf16.msra.mxu1 %v1532_v22  ;;  %v1616_v22 = vld [vmem:[%s1798_s3 + $0x58] sm:$0xff]  }
  0x61   :  { %999 = vmatpush1.bf16.msra.mxu0 %v1535_v23  ;;  %914 = vmatprep.subr.bf16.mxu1 %v1540_v24  ;;  %v1617_v23 = vld [vmem:[%s1798_s3 + $0x18] sm:$0xff]   ;;  %v1618_v24 = vld [vmem:[%s1798_s3 + $0x60] sm:$0xff]  }
  0x62   :  { %1000 = vmatprep.subr.bf16.mxu0 %v1543_v25  ;;  %v1619_v25 = vld [vmem:[%s1798_s3 + $0x20] sm:$0xff]  }
  0x64   :  { %915 = vmatpush1.bf16.msra.mxu1 %v1538_v26  ;;  %v1620_v26 = vld [vmem:[%s1798_s3 + $0x68] sm:$0xff]  }
  0x65   :  { %1001 = vmatpush1.bf16.msra.mxu0 %v1541_v27  ;;  %916 = vmatprep.subr.bf16.mxu1 %v1546_v28  ;;  %v1621_v27 = vld [vmem:[%s1798_s3 + $0x28] sm:$0xff]   ;;  %v1622_v28 = vld [vmem:[%s1798_s3 + $0x70] sm:$0xff]  }
  0x66   :  { %1002 = vmatprep.subr.bf16.mxu0 %v1549_v29  ;;  %v1623_v29 = vld [vmem:[%s1798_s3 + $0x30] sm:$0xff]  }
  0x68   :  { %917 = vmatpush1.bf16.msra.mxu1 %v1544_v30  ;;  %v1624_v30 = vld [vmem:[%s1798_s3 + $0x78] sm:$0xff]  }
  0x69   :  { %1003 = vmatpush1.bf16.msra.mxu0 %v1547_v31  ;;  %918 = vmatprep.subr.bf16.mxu1 %v1552_v32  ;;  %v1625_v31 = vld [vmem:[%s1798_s3 + $0x38] sm:$0xff]   ;;  %v173_v32 = vlaneseq }
  0x6a   :  { %1004 = vmatprep.subr.bf16.mxu0 %v1555_v33 }
  0x6b   :  { %v174_v33 = vshrl.u32 %v173_v32, 7 }
  0x6c   :  { %919 = vmatpush1.bf16.msra.mxu1 %v1550_v34 }
  0x6d   :  { %1005 = vmatpush1.bf16.msra.mxu0 %v1553_v35  ;;  %920 = vmatprep.subr.bf16.mxu1 %v1558_v40  ;;  %v175_v34 = vsub.s32 0, %v174_v33  ;;  %v171_v35 = vld [vmem:[%s1797_s2] sm:$0x3]  ;;  %v179_v36 = vsub.s32 1, %v174_v33 }
  0x6e   :  { %1006 = vmatprep.subr.bf16.mxu0 %v1561_v42 }
  0x6f   :  { %v176_v37 = vrot.slane %v171_v35, %v175_v34  ;;  %v180_v38 = vrot.slane %v171_v35, %v179_v36 }
  0x70   :  { %921 = vmatpush1.bf16.msra.mxu1 %v1556_v44 }
  0x71   :  { %1007 = vmatpush1.bf16.msra.mxu0 %v1559_v45  ;;  %922 = vmatprep.subr.bf16.mxu1 %v1564_v46 }
  0x72   :  { %1008 = vmatprep.subr.bf16.mxu0 %v1567_v47 }
  0x74   :  { %923 = vmatpush1.bf16.msra.mxu1 %v1562_v48 }
  0x75   :  { %1009 = vmatpush1.bf16.msra.mxu0 %v1565_v49  ;;  %924 = vmatprep.subr.bf16.mxu1 %v1570_v50 }
  0x76   :  { %1010 = vmatprep.subr.bf16.mxu0 %v1573_v51 }
  0x78   :  { %925 = vmatpush1.bf16.msra.mxu1 %v1568_v52 }
  0x79   :  { %1011 = vmatpush1.bf16.msra.mxu0 %v1571_v53  ;;  %926 = vmatprep.subr.bf16.mxu1 %v1576_v54 }
  0x7a   :  { %1012 = vmatprep.subr.bf16.mxu0 %v1579_v55 }
  0x7c   :  { %927 = vmatpush1.bf16.msra.mxu1 %v1574_v56 }
  0x7d   :  { %1013 = vmatpush1.bf16.msra.mxu0 %v1577_v57  ;;  %928 = vmatprep.subr.bf16.mxu1 %v1582_v58 }
  0x7e   :  { %1014 = vmatprep.subr.bf16.mxu0 %v1585_v59 }
  0x80   :  { %929 = vmatpush1.bf16.msra.mxu1 %v1580_v60 }
  0x81   :  { %1015 = vmatpush1.bf16.msra.mxu0 %v1583_v61  ;;  %930 = vmatprep.subr.bf16.mxu1 %v1588_v62  ;;  %v1360_v62 = vld [vmem:[%s1799_s4] ss:$0 sm:$0xff] }
  0x82   :  { %1016 = vmatprep.subr.bf16.mxu0 %v1591_v63 }
  0x84   :  { %931 = vmatpush1.bf16.msra.mxu1 %v1586_v0 }
  0x85   :  { %1017 = vmatpush1.bf16.msra.mxu0 %v1589_v1  ;;  %932 = vmatprep.subr.bf16.mxu1 %v1594_v2 }
  0x86   :  { %1018 = vmatprep.subr.bf16.mxu0 %v1597_v3 }
  0x88   :  { %933 = vmatpush1.bf16.msra.mxu1 %v1592_v4 }
  0x89   :  { %1019 = vmatpush1.bf16.msra.mxu0 %v1595_v5  ;;  %934 = vmatprep.subr.bf16.mxu1 %v1600_v6 }
  0x8a   :  { %1020 = vmatprep.subr.bf16.mxu0 %v1603_v7 }
  0x8c   :  { %935 = vmatpush1.bf16.msra.mxu1 %v1598_v8 }
  0x8d   :  { %1021 = vmatpush1.bf16.msra.mxu0 %v1601_v9  ;;  %936 = vmatprep.subr.bf16.mxu1 %v1606_v10 }
  0x8e   :  { %1022 = vmatprep.subr.bf16.mxu0 %v1609_v11 }
  0x90   :  { %937 = vmatpush1.bf16.msra.mxu1 %v1604_v12 }
  0x91   :  { %1023 = vmatpush1.bf16.msra.mxu0 %v1607_v13  ;;  %1377 = vmatprep.subr.bf16.mxu1 %v1610_v14 }
  0x93   :  { %939 = vmatmul.mubr.bf16.vlgmr.msra.gmra.mrb[0].mxu1 %v1226_v15 }
  0x94   :  { %1025 = vmatmul.mubr.bf16.vlgmr.msra.gmra.mrb[0].mxu0 %v1230_v16  ;;  %1378 = vmatpush3.bf16.msra.mxu1 %v1611_v17 }
  0x95   :  { %1379 = vmatprep.subr.bf16.mxu1 %v1612_v18 }
  0x98   :  { %1380 = vmatpush3.bf16.msra.mxu1 %v1613_v19 }
  0x99   :  { %1381 = vmatprep.subr.bf16.mxu1 %v1614_v20 }
  0x9c   :  { %1382 = vmatpush3.bf16.msra.mxu1 %v1615_v21 }
  0x9d   :  { %1383 = vmatprep.subr.bf16.mxu1 %v1616_v22 }
  0xa0   :  { %1384 = vmatpush3.bf16.msra.mxu1 %v1617_v23 }
  0xa1   :  { %1385 = vmatprep.subr.bf16.mxu1 %v1618_v24 }
  0xa4   :  { %1386 = vmatpush3.bf16.msra.mxu1 %v1619_v25 }
  0xa5   :  { %1387 = vmatprep.subr.bf16.mxu1 %v1620_v26 }
  0xa8   :  { %1388 = vmatpush3.bf16.msra.mxu1 %v1621_v27 }
  0xa9   :  { %1389 = vmatprep.subr.bf16.mxu1 %v1622_v28 }
  0xac   :  { %1390 = vmatpush3.bf16.msra.mxu1 %v1623_v29 }
  0xad   :  { %1391 = vmatprep.subr.bf16.mxu1 %v1624_v30 }
  0xb0   :  { %1392 = vmatpush3.bf16.msra.mxu1 %v1625_v31 }
 0x166   :  { %v940_v39 = vpop.f32.mrb[0].mxu1 }
 0x167   :  { %v1026_v40 = vpop.f32.mrb[0].mxu0  ;;  %v1399_v41 = vadd.f32 %v940_v39, %v176_v37  ;;  %v942_v42 = vpop.f32.mrb[1].mxu1 }
 0x168   :  { %v1028_v43 = vpop.f32.mrb[1].mxu0  ;;  %v1401_v44 = vadd.f32 %v942_v42, %v180_v38  ;;  %v944_v45 = vpop.f32.mrb[2].mxu1 }
 0x169   :  { %v1030_v46 = vpop.f32.mrb[2].mxu0  ;;  %v1400_v47 = vadd.f32 %v1399_v41, %v1026_v40  ;;  %v1403_v48 = vadd.f32 %v944_v45, %v176_v37  ;;  %v946_v49 = vpop.f32.mrb[3].mxu1 }
 0x16a   :  { %v1032_v50 = vpop.f32.mrb[3].mxu0  ;;  %v1402_v51 = vadd.f32 %v1401_v44, %v1028_v43  ;;  %v1405_v52 = vadd.f32 %v946_v49, %v180_v38 }
 0x16b   :  { %v1404_v53 = vadd.f32 %v1403_v48, %v1030_v46  ;;  %v1035_v55 = vmax.f32 %v1400_v47, 0.0 }
 0x16c   :  { %v1406_v54 = vadd.f32 %v1405_v52, %v1032_v50  ;;  %v1036_v57 = vmax.f32 %v1402_v51, 0.0 }
 0x16d   :  { %v1037_v56 = vmax.f32 %v1404_v53, 0.0 }
 0x16e   :  { %v1038_v58 = vmax.f32 %v1406_v54, 0.0 }
 0x16f   :  { %v1039_v59 = vpack.c.bf16 %v1037_v56, %v1035_v55 }
 0x170   :  { %v1040_v60 = vpack.c.bf16 %v1038_v58, %v1036_v57 }
 0x172   :  { %1208 = vmatprep.mubr.bf16.mxu1 %v1040_v60 }
 0x173   :  { %1209 = vmatmul.mubr.bf16.vlgmr.msra.gmra.mrb[4].mxu1 %v1039_v59 }
 0x246   :  { %v1393_v61 = vpop.f32.mrb[4].mxu1 }
 0x247   :  { %v1394_v63 = vpop.f32.mrb[5].mxu1 }
 0x248   :  { %v1395_v0 = vadd.f32 %v1394_v63, %v1393_v61  ;;  %v1396_v1 = vpop.f32.mrb[6].mxu1 }
 0x249   :  { %v1397_v2 = vpop.f32.mrb[7].mxu1 }
 0x24a   :  { %v1211_v3 = vadd.f32 %v1395_v0, %v1360_v62  ;;  %v1398_v4 = vadd.f32 %v1397_v2, %v1396_v1 }
 0x24c   :  { %1217 = vst [vmem:[%s1800_s5] sm:$0xff] %v1211_v3  ;;  %v1214_v5 = vadd.f32 %v1398_v4, %v1360_v62 }
 0x24e   :  { %1218 = vst [vmem:[%s1800_s5 + $0x8] sm:$0xff] %v1214_v5 }
 0x24f   :  { %1223 = vsyncpa [#allocation3], 1 }

</bundles_post_ra>
